<compile_context>
chip_gen: v6e
topology: v6e:2x2x1
jax: 0.10.0
libtpu: 0.0.40
codegen_flags: <defaults>
</compile_context>

<pallas_src>
import functools

import jax
import jax.numpy as jnp
from jax import lax
from jax.experimental import pallas as pl
from jax.experimental.pallas import tpu as pltpu

F32 = jnp.float32
BF16 = jnp.bfloat16
BN_EPS = 1e-5            # torch.nn.BatchNorm default eps
SQUASH_EPS = 1e-7        # CapsuleLayer.squash eps
L2_EPS = 1e-12           # F.normalize eps


# --------------------------------------------------------------------------
# Kernel A: skip_fuser 1x1 conv + BatchNorm2d (batch stats) + ReLU
# --------------------------------------------------------------------------

def _fuser_kernel(x_ref, w_ref, b_ref, g_ref, beta_ref, o_ref):
    y = jnp.dot(x_ref[...].astype(BF16), w_ref[...].astype(BF16),
                preferred_element_type=F32) + b_ref[...]
    mean = jnp.mean(y, axis=0, keepdims=True)
    var = jnp.mean((y - mean) ** 2, axis=0, keepdims=True)
    yhat = (y - mean) * lax.rsqrt(var + BN_EPS)
    o_ref[...] = jnp.maximum(yhat * g_ref[...] + beta_ref[...], 0.0)


def fuse_bn_relu(x, w, b, g, beta):
    # TODO(synk): at production feature-map sizes this single-block kernel
    # needs an M-grid (with two-pass / accumulated BN statistics) to fit
    # v7x's 64 MiB VMEM and use both TensorCores.
    return pl.pallas_call(
        _fuser_kernel,
        out_shape=jax.ShapeDtypeStruct((x.shape[0], w.shape[1]), F32),
    )(x, w, b.reshape(1, -1), g.reshape(1, -1), beta.reshape(1, -1))


# --------------------------------------------------------------------------
# Kernel B: self-attention pooling + out-proj + capsule routing, grid=(B,)
# --------------------------------------------------------------------------

def _attn_caps_kernel(x_ref, wq_ref, wk_ref, wv_ref, bq_ref, bk_ref, bv_ref,
                      bias_ref, ow_ref, ob_ref, capsw_ref, o_ref, *,
                      num_heads, head_dim, num_caps, d_in, d_out, scale,
                      num_iterations):
    x = x_ref[0].astype(BF16)                                     # (T, C)
    q = jnp.dot(x, wq_ref[...].astype(BF16), preferred_element_type=F32) + bq_ref[...]
    k = jnp.dot(x, wk_ref[...].astype(BF16), preferred_element_type=F32) + bk_ref[...]
    v = jnp.dot(x, wv_ref[...].astype(BF16), preferred_element_type=F32) + bv_ref[...]

    # per-head attention (unrolled; all heads in one kernel invocation)
    head_means = []
    for h in range(num_heads):
        sl = slice(h * head_dim, (h + 1) * head_dim)
        qh = q[:, sl].astype(BF16)
        kh = k[:, sl].astype(BF16)
        vh = v[:, sl].astype(BF16)
        logits = lax.dot_general(qh, kh, (((1,), (1,)), ((), ())),
                                 preferred_element_type=F32) * scale
        logits = logits + bias_ref[h]
        m = jnp.max(logits, axis=-1, keepdims=True)
        e = jnp.exp(logits - m)
        p = e * pl.reciprocal(jnp.sum(e, axis=-1, keepdims=True), approx=True)
        oh = jnp.dot(p.astype(BF16), vh, preferred_element_type=F32)  # (T, HD)
        head_means.append(jnp.mean(oh, axis=0, keepdims=True))        # (1, HD)
    mean_attn = jnp.concatenate(head_means, axis=1)                   # (1, C)

    # out_proj applied after the token mean (linear -> commutes exactly)
    pooled = jnp.dot(mean_attn.astype(BF16), ow_ref[...].astype(BF16),
                     preferred_element_type=F32) + ob_ref[...]        # (1, C)

    # capsule u_hat: per input capsule i, (1, d_in) @ (d_in, n_out*d_out)
    u_rows = []
    for i in range(num_caps):
        seg = pooled[:, i * d_in:(i + 1) * d_in].astype(BF16)
        u_rows.append(jnp.dot(seg, capsw_ref[i].astype(BF16),
                              preferred_element_type=F32))
    u = jnp.concatenate(u_rows, axis=0)          # (n_in, n_out*d_out) lane-dense

    # dynamic routing; keep everything (n, 128)-lane-dense and use small MXU
    # dots against a group-indicator matrix instead of 3-D axis reductions.
    n_out = num_caps
    m_out = n_out * d_out
    col_group = lax.broadcasted_iota(jnp.int32, (n_out, m_out), 1) // d_out
    row_ids = lax.broadcasted_iota(jnp.int32, (n_out, m_out), 0)
    expand = (col_group == row_ids).astype(F32)  # (n_out, m_out) 0/1 indicator

    b_log = jnp.zeros((num_caps, n_out), F32)
    v_out = jnp.zeros((1, m_out), F32)
    for it in range(num_iterations):
        mb = jnp.max(b_log, axis=1, keepdims=True)        # softmax over n_out
        eb = jnp.exp(b_log - mb)
        c = eb * pl.reciprocal(jnp.sum(eb, axis=1, keepdims=True), approx=True)
        c_e = jnp.dot(c, expand, preferred_element_type=F32)     # (n_in, m_out)
        s = jnp.sum(c_e * u, axis=0, keepdims=True)              # (1, m_out)
        mag_g = lax.dot_general(s * s, expand, (((1,), (1,)), ((), ())),
                                preferred_element_type=F32)      # (1, n_out)
        mag_sq = jnp.dot(mag_g, expand, preferred_element_type=F32)  # (1, m_out)
        v_out = s * (mag_sq / (1.0 + mag_sq)) * lax.rsqrt(mag_sq + SQUASH_EPS)
        if it < num_iterations - 1:
            agree = lax.dot_general(u * v_out, expand, (((1,), (1,)), ((), ())),
                                    preferred_element_type=F32)  # (n_in, n_out)
            b_log = b_log + agree

    o_ref[0] = v_out                                             # (1, emb)


def attn_capsule(fused_btc, wq, wk, wv, bq, bk, bv, rel_bias, ow, ob,
                 caps_w_r, *, num_heads, num_caps, num_iterations=3):
    B, T, C = fused_btc.shape
    head_dim = C // num_heads
    n_in, d_in, m_out = caps_w_r.shape
    d_out = m_out // num_caps

    def full(a):
        return pl.BlockSpec(a.shape, lambda b, _nd=a.ndim: (0,) * _nd)

    out = pl.pallas_call(
        functools.partial(_attn_caps_kernel, num_heads=num_heads,
                          head_dim=head_dim, num_caps=num_caps, d_in=d_in,
                          d_out=d_out, scale=head_dim ** -0.5,
                          num_iterations=num_iterations),
        out_shape=jax.ShapeDtypeStruct((B, 1, m_out), F32),
        grid=(B,),
        in_specs=[pl.BlockSpec((1, T, C), lambda b: (b, 0, 0)),
                  full(wq), full(wk), full(wv),
                  full(bq), full(bk), full(bv),
                  full(rel_bias), full(ow), full(ob), full(caps_w_r)],
        out_specs=pl.BlockSpec((1, 1, m_out), lambda b: (b, 0, 0)),
        compiler_params=pltpu.CompilerParams(
            dimension_semantics=("parallel",)),
    )(fused_btc, wq, wk, wv, bq, bk, bv, rel_bias, ow, ob, caps_w_r)
    return out[:, 0, :]                                          # (B, emb)


# --------------------------------------------------------------------------
# Kernel C: depth branch (3x3 conv via im2col + BN + ReLU + global avg pool)
#           + MLP (linear + BN1d + ReLU, linear) + L2 normalize
# --------------------------------------------------------------------------

def _depth_mlp_kernel(cols_ref, dw_ref, db_ref, dg_ref, dbeta_ref, pool_ref,
                      gen_ref, w1g_ref, w1d_ref, b1_ref, g1_ref, beta1_ref,
                      w2_ref, b2_ref, o_ref):
    # depth conv (im2col matmul) + BN2d (batch stats over B*T rows) + ReLU
    y = jnp.dot(cols_ref[...].astype(BF16), dw_ref[...].astype(BF16),
                preferred_element_type=F32) + db_ref[...]
    mean = jnp.mean(y, axis=0, keepdims=True)
    var = jnp.mean((y - mean) ** 2, axis=0, keepdims=True)
    y = jnp.maximum((y - mean) * lax.rsqrt(var + BN_EPS) * dg_ref[...]
                    + dbeta_ref[...], 0.0)
    # global average pool per batch element as a pooling matmul (no reshape)
    depth_feat = jnp.dot(pool_ref[...], y, preferred_element_type=F32)

    # MLP layer 1 on [general | depth] without materializing the concat
    h = (jnp.dot(gen_ref[...].astype(BF16), w1g_ref[...].astype(BF16),
                 preferred_element_type=F32)
         + jnp.dot(depth_feat.astype(BF16), w1d_ref[...].astype(BF16),
                   preferred_element_type=F32)
         + b1_ref[...])
    m1 = jnp.mean(h, axis=0, keepdims=True)
    v1 = jnp.mean((h - m1) ** 2, axis=0, keepdims=True)
    h = jnp.maximum((h - m1) * lax.rsqrt(v1 + BN_EPS) * g1_ref[...]
                    + beta1_ref[...], 0.0)

    # MLP layer 2 + F.normalize(p=2, dim=1)
    out = jnp.dot(h.astype(BF16), w2_ref[...].astype(BF16),
                  preferred_element_type=F32) + b2_ref[...]
    norm = jnp.sqrt(jnp.sum(out * out, axis=-1, keepdims=True))
    o_ref[...] = out / jnp.maximum(norm, L2_EPS)


def depth_mlp(cols, depth_w, depth_b, depth_g, depth_beta, pool_mat, general,
              w1g, w1d, b1, g1, beta1, w2, b2):
    B = pool_mat.shape[0]
    emb = w2.shape[1]
    return pl.pallas_call(
        _depth_mlp_kernel,
        out_shape=jax.ShapeDtypeStruct((B, emb), F32),
    )(cols, depth_w, depth_b.reshape(1, -1), depth_g.reshape(1, -1),
      depth_beta.reshape(1, -1), pool_mat, general, w1g, w1d,
      b1.reshape(1, -1), g1.reshape(1, -1), beta1.reshape(1, -1),
      w2, b2.reshape(1, -1))


# --------------------------------------------------------------------------
# JAX glue (layout / precompute only)
# --------------------------------------------------------------------------

def make_relative_bias(H, W, rel_param):
    gy = jnp.linspace(-1.0, 1.0, H)
    gx = jnp.linspace(-1.0, 1.0, W)
    gy, gx = jnp.meshgrid(gy, gx, indexing="ij")
    grid = jnp.stack([gy, gx], axis=-1).reshape(-1, 2)            # [T, 2]
    rel = grid[:, None, :] - grid[None, :, :]                     # [T, T, 2]
    return jnp.einsum("ijc,hc->hij", rel, rel_param)              # [nh, T, T]


def im2col_3x3(x_nhwc):
    # TODO(synk): at real feature-map sizes fuse these 9 taps into the depth
    # matmul (9 accumulating dots) instead of materializing [B*T, 9C] in HBM.
    B, H, W, C = x_nhwc.shape
    xp = jnp.pad(x_nhwc, ((0, 0), (1, 1), (1, 1), (0, 0)))
    patches = [xp[:, dy:dy + H, dx:dx + W, :]
               for dy in range(3) for dx in range(3)]
    return jnp.stack(patches, axis=3).reshape(B * H * W, 9 * C)


# --------------------------------------------------------------------------
# ProjectionHead forward
# --------------------------------------------------------------------------

def projection_head_forward(bottleneck, skips, params, num_heads, num_caps):
    B, C, H, W = bottleneck.shape
    T = H * W

    # adaptive_avg_pool2d of skips to bottleneck size + channel concat
    x = jnp.transpose(bottleneck, (0, 2, 3, 1))                   # NHWC
    pooled_skips = []
    for s in skips:
        Bs, Cs, Hs, Ws = s.shape
        fy, fx = Hs // H, Ws // W
        s_nhwc = jnp.transpose(s, (0, 2, 3, 1))
        pooled_skips.append(
            s_nhwc.reshape(Bs, H, fy, W, fx, Cs).mean(axis=(2, 4)))
    fused_in = jnp.concatenate([x] + pooled_skips, axis=-1)
    fused_tok = fused_in.reshape(B * T, -1)

    # Kernel A: skip_fuser (1x1 conv) + BN2d + ReLU
    fused = fuse_bn_relu(fused_tok, params["fuser_w"], params["fuser_b"],
                         params["fuser_g"], params["fuser_beta"])    # [B*T, C]

    # weight-only reshapes (static, negligible)
    wq, wk, wv = jnp.split(params["qkv_w"], 3, axis=1)
    bq, bk, bv = [t.reshape(1, -1) for t in jnp.split(params["qkv_b"], 3)]
    rel_bias = make_relative_bias(H, W, params["rel_bias"])          # [nh,T,T]
    caps_w = params["caps_W"]                      # (n_in, n_out, d_out, d_in)
    n_in, n_out, d_out, d_in = caps_w.shape
    caps_w_r = jnp.transpose(caps_w, (0, 3, 1, 2)).reshape(n_in, d_in,
                                                           n_out * d_out)

    # Kernel B: attention pooling + out-proj + capsule routing (grid over B)
    general = attn_capsule(fused.reshape(B, T, C), wq, wk, wv, bq, bk, bv,
                           rel_bias, params["outp_w"],
                           params["outp_b"].reshape(1, -1), caps_w_r,
                           num_heads=num_heads, num_caps=num_caps)   # [B, emb]

    # Kernel C: depth branch + MLP tail + L2 normalize
    cols = im2col_3x3(fused.reshape(B, H, W, C))                     # [B*T,9C]
    row_ids = jnp.arange(B)[:, None]
    col_ids = jnp.arange(B * T)[None, :] // T
    pool_mat = (row_ids == col_ids).astype(F32) / T                  # [B, B*T]
    emb_dim = n_out * d_out
    w1g = params["mlp1_w"][:emb_dim]                                 # general part
    w1d = params["mlp1_w"][emb_dim:]                                 # depth part
    emb = depth_mlp(cols, params["depth_w"], params["depth_b"],
                    params["depth_g"], params["depth_beta"], pool_mat, general,
                    w1g, w1d, params["mlp1_b"], params["mlp1_g"],
                    params["mlp1_beta"], params["mlp2_w"], params["mlp2_b"])
    return emb


# --------------------------------------------------------------------------
# Deterministic parameter init (shapes follow the module's __init__, scaled
# down; depth branch uses 32 channels instead of the hard-coded 256).
# --------------------------------------------------------------------------

def init_params(key, *, C, skip_c, num_heads, num_caps, emb, hidden, depth_c):
    ks = jax.random.split(key, 20)
    rnd = lambda k, shape, s=0.05: jax.random.normal(k, shape, dtype=F32) * s
    d_in_caps = C // num_caps
    d_out_caps = emb // num_caps
    return dict(
        fuser_w=rnd(ks[0], (C + skip_c, C)), fuser_b=rnd(ks[1], (C,)),
        fuser_g=jnp.ones((C,), F32), fuser_beta=jnp.zeros((C,), F32),
        qkv_w=rnd(ks[2], (C, 3 * C)), qkv_b=rnd(ks[3], (3 * C,)),
        outp_w=rnd(ks[4], (C, C)), outp_b=rnd(ks[5], (C,)),
        rel_bias=rnd(ks[6], (num_heads, 2), 0.5),
        caps_W=rnd(ks[7], (num_caps, num_caps, d_out_caps, d_in_caps), 0.5),
        depth_w=rnd(ks[8], (9 * C, depth_c)), depth_b=rnd(ks[9], (depth_c,)),
        depth_g=jnp.ones((depth_c,), F32), depth_beta=jnp.zeros((depth_c,), F32),
        mlp1_w=rnd(ks[10], (emb + depth_c, hidden)), mlp1_b=rnd(ks[11], (hidden,)),
        mlp1_g=jnp.ones((hidden,), F32), mlp1_beta=jnp.zeros((hidden,), F32),
        mlp2_w=rnd(ks[12], (hidden, emb)), mlp2_b=rnd(ks[13], (emb,)),
    )


if __name__ == "__main__":
    key = jax.random.PRNGKey(0)
    k1, k2, k3, kp = jax.random.split(key, 4)

    B, C, H, W = 2, 64, 4, 4
    num_heads, num_caps = 4, 8
    emb_dim, hidden_dim, depth_c = 128, 128, 32

    bottleneck = jax.random.normal(k1, (B, C, H, W), dtype=F32)        # NCHW
    skips = [jax.random.normal(k2, (B, 16, 8, 8), dtype=F32),
             jax.random.normal(k3, (B, 16, 16, 16), dtype=F32)]        # NCHW

    params = init_params(kp, C=C, skip_c=32, num_heads=num_heads,
                         num_caps=num_caps, emb=emb_dim,
                         hidden=hidden_dim, depth_c=depth_c)

    embedding = projection_head_forward(bottleneck, skips, params,
                                        num_heads, num_caps)
    jax.block_until_ready(embedding)

    assert embedding.shape == (B, emb_dim), embedding.shape
    assert bool(jnp.all(jnp.isfinite(embedding)))
    # rows are L2-normalized
    assert bool(jnp.allclose(jnp.sum(embedding ** 2, axis=1), 1.0, atol=1e-4))
    print("KERNEL_OK")
</pallas_src>

<mosaic_0001>
module attributes {stable_mosaic.version = 11 : i64} {
  func.func @_fuser_kernel(%arg0: memref<32x96xf32, #tpu.memory_space<vmem>>, %arg1: memref<96x64xf32, #tpu.memory_space<vmem>>, %arg2: memref<1x64xf32, #tpu.memory_space<vmem>>, %arg3: memref<1x64xf32, #tpu.memory_space<vmem>>, %arg4: memref<1x64xf32, #tpu.memory_space<vmem>>, %arg5: memref<32x64xf32, #tpu.memory_space<vmem>>) attributes {dimension_semantics = [], scalar_prefetch = 0 : i64, scratch_operands = 0 : i64, tpu.core_type = #tpu.core_type<tc>} {
    %c0 = arith.constant 0 : index
    %c0_0 = arith.constant 0 : index
    %0 = vector.load %arg0[%c0, %c0_0] : memref<32x96xf32, #tpu.memory_space<vmem>>, vector<32x96xf32>
    %1 = arith.truncf %0 : vector<32x96xf32> to vector<32x96xbf16>
    %c0_1 = arith.constant 0 : index
    %c0_2 = arith.constant 0 : index
    %2 = vector.load %arg1[%c0_1, %c0_2] : memref<96x64xf32, #tpu.memory_space<vmem>>, vector<96x64xf32>
    %3 = arith.truncf %2 : vector<96x64xf32> to vector<96x64xbf16>
    %cst = arith.constant dense<0.000000e+00> : vector<32x64xf32>
    %4 = tpu.matmul %1, %3, %cst {dimension_numbers = #tpu.dot_dimension_numbers<[1], [0], [0], [1], [0, 0, 1, 1], [], []>} : vector<32x96xbf16>, vector<96x64xbf16>, vector<32x64xf32> -> vector<32x64xf32>
    %c0_3 = arith.constant 0 : index
    %c0_4 = arith.constant 0 : index
    %5 = vector.load %arg2[%c0_3, %c0_4] : memref<1x64xf32, #tpu.memory_space<vmem>>, vector<1x64xf32>
    %6 = vector.broadcast %5 : vector<1x64xf32> to vector<32x64xf32>
    %7 = arith.addf %4, %6 : vector<32x64xf32>
    %cst_5 = arith.constant dense<0.000000e+00> : vector<64xf32>
    %8 = vector.multi_reduction <add>, %7, %cst_5 [0] : vector<32x64xf32> to vector<64xf32>
    %9 = vector.shape_cast %8 : vector<64xf32> to vector<1x64xf32>
    %cst_6 = arith.constant 3.200000e+01 : f32
    %10 = vector.broadcast %cst_6 : f32 to vector<1x64xf32>
    %11 = arith.divf %9, %10 : vector<1x64xf32>
    %12 = vector.broadcast %11 : vector<1x64xf32> to vector<32x64xf32>
    %13 = arith.subf %7, %12 : vector<32x64xf32>
    %14 = arith.mulf %13, %13 : vector<32x64xf32>
    %cst_7 = arith.constant dense<0.000000e+00> : vector<64xf32>
    %15 = vector.multi_reduction <add>, %14, %cst_7 [0] : vector<32x64xf32> to vector<64xf32>
    %16 = vector.shape_cast %15 : vector<64xf32> to vector<1x64xf32>
    %cst_8 = arith.constant 3.200000e+01 : f32
    %17 = vector.broadcast %cst_8 : f32 to vector<1x64xf32>
    %18 = arith.divf %16, %17 : vector<1x64xf32>
    %19 = vector.broadcast %11 : vector<1x64xf32> to vector<32x64xf32>
    %20 = arith.subf %7, %19 : vector<32x64xf32>
    %cst_9 = arith.constant 9.99999974E-6 : f32
    %21 = vector.broadcast %cst_9 : f32 to vector<1x64xf32>
    %22 = arith.addf %18, %21 : vector<1x64xf32>
    %23 = math.rsqrt %22 : vector<1x64xf32>
    %24 = vector.broadcast %23 : vector<1x64xf32> to vector<32x64xf32>
    %25 = arith.mulf %20, %24 : vector<32x64xf32>
    %c0_10 = arith.constant 0 : index
    %c0_11 = arith.constant 0 : index
    %26 = vector.load %arg3[%c0_10, %c0_11] : memref<1x64xf32, #tpu.memory_space<vmem>>, vector<1x64xf32>
    %27 = vector.broadcast %26 : vector<1x64xf32> to vector<32x64xf32>
    %28 = arith.mulf %25, %27 : vector<32x64xf32>
    %c0_12 = arith.constant 0 : index
    %c0_13 = arith.constant 0 : index
    %29 = vector.load %arg4[%c0_12, %c0_13] : memref<1x64xf32, #tpu.memory_space<vmem>>, vector<1x64xf32>
    %30 = vector.broadcast %29 : vector<1x64xf32> to vector<32x64xf32>
    %31 = arith.addf %28, %30 : vector<32x64xf32>
    %cst_14 = arith.constant 0.000000e+00 : f32
    %32 = vector.broadcast %cst_14 : f32 to vector<32x64xf32>
    %33 = arith.maximumf %31, %32 : vector<32x64xf32>
    %c0_15 = arith.constant 0 : index
    %c0_16 = arith.constant 0 : index
    %34 = vector.load %arg5[%c0_15, %c0_16] : memref<32x64xf32, #tpu.memory_space<vmem>>, vector<32x64xf32>
    tpu.vector_store %arg5[%c0_15, %c0_16], %33 {strides = array<i32>} : memref<32x64xf32, #tpu.memory_space<vmem>>, vector<32x64xf32>,
    return
  }
}

</mosaic_0001>

<bundles_post_ra>
// kernel: tpu_custom_call.1
= control target key start
LH: loop header
LB: loop body
LE: loop exit
PB: predicated region body
PF: predicated region fallthrough
CT: control target
= control target key end

     0   :  { %vm53_vm0 = vcmask 785408   ;;  %s362_s0 = inlined_call_operand.vmem [shape: f32[32,96], index: 0, kind: input, shape index: {}]   ;;  %s363_s1 = inlined_call_operand.vmem [shape: f32[96,64], index: 1, kind: input, shape index: {}]   ;;  %s364_s2 = inlined_call_operand.vmem [shape: f32[1,64], index: 2, kind: input, shape index: {}]   ;;  %s365_s3 = inlined_call_operand.vmem [shape: f32[1,64], index: 3, kind: input, shape index: {}]   ;;  %s366_s4 = inlined_call_operand.vmem [shape: f32[1,64], index: 4, kind: input, shape index: {}]   ;;  %s367_s5 = inlined_call_operand.hbm [shape: f32[32,64], index: 5, kind: output, shape index: {}]  }
   0x1   :  { %v38_v0 = vld [vmem:[%s363_s1 + $0x50] sm:$0xff]  ;;  %v39_v1 = vld [vmem:[%s363_s1 + $0x58] sm:$0xff]  ;;  %v36_v2 = vld [vmem:[%s363_s1 + $0x40] sm:$0xff] }
   0x2   :  { %v45_v3 = vpack.c.bf16 %v39_v1, %v38_v0  ;;  %v37_v4 = vld [vmem:[%s363_s1 + $0x48] sm:$0xff]  ;;  %v34_v6 = vld [vmem:[%s363_s1 + $0x30] sm:$0xff]  ;;  %v35_v7 = vld [vmem:[%s363_s1 + $0x38] sm:$0xff] }
   0x3   :  { %v44_v5 = vpack.c.bf16 %v37_v4, %v36_v2  ;;  %v22_v8 = vld [vmem:[%s362_s0] sm:$0xff]  ;;  %v23_v9 = vld [vmem:[%s362_s0 + $0x8] sm:$0xff]  ;;  %v43_v10 = vpack.c.bf16 %v35_v7, %v34_v6 }
   0x4   :  { %212 = vmatprep.subr.bf16.mxu0 %v45_v3  ;;  %v26_v11 = vpack.c.bf16 %v23_v9, %v22_v8 }
   0x5   :  { %213 = vmatpush3.bf16.msra.mxu0 %v45_v3 }
   0x6   :  { %214 = vmatprep.subr.bf16.mxu0 %v44_v5 }
   0x7   :  { %10 = vsyncpa [#allocation3], 0  ;;  %v32_v12 = vld [vmem:[%s363_s1 + $0x20] sm:$0xff]  ;;  %v33_v13 = vld [vmem:[%s363_s1 + $0x28] sm:$0xff]  ;;  %224 = vmatprep.mubr.msk.bf16.mxu0 %vm53_vm0, %v26_v11  ;;  %vm109_vm1 = vcmask 523264   ;;  %s255_s28 = smov [#allocation2]  }
   0x8   :  { %v42_v14 = vpack.c.bf16 %v33_v13, %v32_v12  ;;  %v30_v15 = vld [vmem:[%s363_s1 + $0x10] sm:$0xff]  ;;  %v31_v16 = vld [vmem:[%s363_s1 + $0x18] sm:$0xff]  ;;  %v28_v18 = vld [vmem:[%s363_s1] sm:$0xff]  ;;  %s188_s29 = sshll.u32 %s255_s28, 4  ;;  %s189_s29 = int_to_ptr.vmem [resolvable:$true] %s188_s29 }
   0x9   :  { %215 = vmatpush3.bf16.msra.mxu0 %v44_v5  ;;  %v41_v17 = vpack.c.bf16 %v31_v16, %v30_v15  ;;  %v29_v19 = vld [vmem:[%s363_s1 + $0x8] sm:$0xff]  ;;  %v24_v21 = vld [vmem:[%s362_s0 + $0x10] sm:$0xff]  ;;  %v25_v22 = vld [vmem:[%s362_s0 + $0x18] sm:$0xff]  ;;  %p238_p1 = scmp.lt.s32.totalorder %s189_s29, %s189_s29 }
   0xa   :  { %216 = vmatprep.subr.bf16.mxu0 %v43_v10  ;;  %v40_v20 = vpack.c.bf16 %v29_v19, %v28_v18  ;;  %v27_v23 = vpack.c.bf16 %v25_v22, %v24_v21  ;;  %v199_v26 = vld [vmem:[%s364_s2] ss:$0 sm:$0xff] }
   0xb   :  { %v202_v7 = vld [vmem:[%s365_s3] ss:$0 sm:$0xff]  ;;  %s233_s3 = scalar_lea.vmem %s189_s29, 512 }
   0xc   :  { %v203_v12 = vld [vmem:[%s366_s4] ss:$0 sm:$0xff]  ;;  %p234_p0 = scmp.ne.s32.totalorder %s189_s29, %s233_s3  ;;  %p239_p2 = scmp.lt.s32.totalorder %s233_s3, %s233_s3 }
   0xd   :  { %217 = vmatpush3.bf16.msra.mxu0 %v43_v10 }
   0xe   :  { %218 = vmatprep.subr.bf16.mxu0 %v42_v14  ;;  %p240_p3 = por %p239_p2, %p238_p1 }
  0x10   :  { %p241_p4 = pnand %p240_p3, %p234_p0 }
  0x11   :  { %219 = vmatpush3.bf16.msra.mxu0 %v42_v14 }
  0x12   :  { %220 = vmatprep.subr.bf16.mxu0 %v41_v17 }
  0x15   :  { %221 = vmatpush3.bf16.msra.mxu0 %v41_v17 }
  0x16   :  { %222 = vmatprep.subr.bf16.mxu0 %v40_v20 }
  0x19   :  { %223 = vmatpush3.bf16.msra.mxu0 %v40_v20 }
  0x1c   :  { %225 = vmatmul.mubr.msk.bf16.vlgmr.msra.gmra.mxu0 %vm53_vm0, %v27_v23 }
  0xdc   :  { %v226_v24 = vpop.f32.mrf.mxu0 }
  0xdd   :  { %v103_v30 = vadd.f32 %v226_v24, %v199_v26 }
  0xde   :  { %v94_v25 = vpop.f32.mrf.mxu0 }
  0xdf   :  { %v95_v28 = vadd.f32 %v199_v26, %v94_v25  ;;  %v113_v36 = vsel %vm109_vm1, %v103_v30, 0.0 }
  0xe0   :  { %v227_v27 = vpop.f32.mrf.mxu0 }
  0xe1   :  { %v110_v32 = vsel %vm109_vm1, %v95_v28, 0.0  ;;  %v106_v33 = vadd.f32 %v227_v27, %v199_v26 }
  0xe2   :  { %v97_v29 = vpop.f32.mrf.mxu0 }
  0xe3   :  { %v98_v31 = vadd.f32 %v199_v26, %v97_v29  ;;  %v115_v38 = vsel %vm109_vm1, %v106_v33, 0.0 }
  0xe5   :  { %v111_v34 = vsel %vm109_vm1, %v98_v31, 0.0 }
  0xe6   :  { %v112_v35 = vadd.f32 %v111_v34, %v110_v32 }
  0xe8   :  { %v114_v37 = vadd.f32 %v113_v36, %v112_v35 }
  0xea   :  { %v116_v39 = vadd.f32 %v115_v38, %v114_v37 }
  0xec   :  { %v117_v40 = vrot.slane %v116_v39, 4 }
  0xee   :  { %v118_v41 = vadd.f32 %v117_v40, %v116_v39 }
  0xf0   :  { %v119_v42 = vrot.slane %v118_v41, 2 }
  0xf2   :  { %v120_v43 = vadd.f32 %v119_v42, %v118_v41 }
  0xf4   :  { %v121_v44 = vrot.slane %v120_v43, 1 }
  0xf6   :  { %v122_v45 = vadd.f32 %v121_v44, %v120_v43 }
  0xf8   :  { %v124_v46 = vmul.f32 0.03125, %v122_v45 }
  0xfa   :  { %v125_v47 = vsub.f32 %v95_v28, %v124_v46  ;;  %v126_v48 = vsub.f32 %v98_v31, %v124_v46  ;;  %v127_v49 = vsub.f32 %v103_v30, %v124_v46  ;;  %v128_v50 = vsub.f32 %v106_v33, %v124_v46 }
  0xfc   :  { %v129_v51 = vmul.f32 %v125_v47, %v125_v47  ;;  %v130_v52 = vmul.f32 %v126_v48, %v126_v48  ;;  %v131_v53 = vmul.f32 %v127_v49, %v127_v49  ;;  %v132_v54 = vmul.f32 %v128_v50, %v128_v50 }
  0xfe   :  { %v133_v55 = vsel %vm109_vm1, %v129_v51, 0.0  ;;  %v134_v56 = vsel %vm109_vm1, %v130_v52, 0.0  ;;  %v136_v58 = vsel %vm109_vm1, %v131_v53, 0.0  ;;  %v138_v60 = vsel %vm109_vm1, %v132_v54, 0.0 }
  0xff   :  { %v135_v57 = vadd.f32 %v134_v56, %v133_v55 }
 0x101   :  { %v137_v59 = vadd.f32 %v136_v58, %v135_v57 }
 0x103   :  { %v139_v61 = vadd.f32 %v138_v60, %v137_v59 }
 0x105   :  { %v140_v62 = vrot.slane %v139_v61, 4 }
 0x107   :  { %v141_v63 = vadd.f32 %v140_v62, %v139_v61 }
 0x109   :  { %v142_v0 = vrot.slane %v141_v63, 2 }
 0x10b   :  { %v143_v1 = vadd.f32 %v142_v0, %v141_v63 }
 0x10d   :  { %v144_v2 = vrot.slane %v143_v1, 1 }
 0x10f   :  { %v145_v3 = vadd.f32 %v144_v2, %v143_v1 }
 0x111   :  { %v146_v4 = vmul.f32 0.03125, %v145_v3 }
 0x113   :  { %v147_v5 = vadd.f32 1e-05, %v146_v4 }
 0x115   :  { %231 = vrsqrt.f32 %v147_v5 }
 0x122   :  { %v232_v6 = vpop.eup %231 }
 0x123   :  { %v149_v8 = vmul.f32 %v232_v6, %v125_v47  ;;  %v150_v9 = vmul.f32 %v232_v6, %v126_v48  ;;  %v151_v10 = vmul.f32 %v232_v6, %v127_v49  ;;  %v152_v11 = vmul.f32 %v232_v6, %v128_v50 }
 0x125   :  { %v160_v13 = vmul.f32 %v202_v7, %v149_v8  ;;  %v161_v14 = vmul.f32 %v202_v7, %v150_v9  ;;  %v162_v15 = vmul.f32 %v202_v7, %v151_v10  ;;  %v163_v16 = vmul.f32 %v202_v7, %v152_v11 }
 0x127   :  { %v171_v17 = vadd.f32 %v203_v12, %v160_v13  ;;  %v172_v18 = vadd.f32 %v203_v12, %v161_v14  ;;  %v173_v19 = vadd.f32 %v203_v12, %v162_v15  ;;  %v174_v20 = vadd.f32 %v203_v12, %v163_v16 }
 0x129   :  { %v175_v21 = vmax.f32 %v171_v17, 0.0  ;;  %v176_v22 = vmax.f32 %v172_v18, 0.0  ;;  %v177_v23 = vmax.f32 %v173_v19, 0.0  ;;  %v178_v24 = vmax.f32 %v174_v20, 0.0 }
 0x12b   :  { %180 = vst.msk [vmem:[#allocation2 + $0x8] sm:$0xff] %vm109_vm1, %v176_v22  ;;  %179 = vst.msk [vmem:[#allocation2] sm:$0xff] %vm109_vm1, %v175_v21 }
 0x12c   :  { %181 = vst.msk [vmem:[#allocation2 + $0x10] sm:$0xff] %vm109_vm1, %v177_v23  ;;  %182 = vst.msk [vmem:[#allocation2 + $0x18] sm:$0xff] %vm109_vm1, %v178_v24 }
 0x12d   :  { %244 = shalt.err (!%p241_p4)
}
 0x12e   :  { %s256_s4 = smov 128   ;;  %s257_s30 = smov 8  }
 0x12f   :  { %194 = dma.vmem_to_hbm [thread:$0]  %s189_s29, 512, %s367_s5, [#allocation3], %s256_s4, %s256_s4, %s257_s30  }
 0x130   :  { %253 = dma.done.wait [#allocation3], 512  }
 0x131   :  { %254 = vsyncadd [#allocation3], 4294966784 }
 0x132   :  { %198 = vsyncpa [#allocation3], 1 }

</bundles_post_ra>
